<compile_context>
chip_gen: v7x
topology: tpu7x:2x2x1
jax: 0.10.0
libtpu: 0.0.40
codegen_flags: <defaults>
</compile_context>

<pallas_src>
import jax
import jax.numpy as jnp
from jax.experimental import pallas as pl
from jax.experimental.pallas import tpu as pltpu

LN_EPS = 1e-5  # PyTorch nn.LayerNorm default


def _layernorm(x, gamma, beta):
    # LayerNorm over the last dim, biased variance (PyTorch semantics). f32.
    mean = jnp.mean(x, axis=-1, keepdims=True)
    var = jnp.mean(jnp.square(x - mean), axis=-1, keepdims=True)
    inv = jax.lax.rsqrt(var + LN_EPS)
    return (x - mean) * inv * gamma + beta


def critic_kernel(
    state_ref, action_ref,
    w1_ref, b1_ref, g1_ref, be1_ref,
    w2_ref, b2_ref, g2_ref, be2_ref,
    wa_ref, ba_ref,
    wq_ref, bq_ref,
    out_ref,
):
    mm_dtype = w1_ref.dtype  # bf16 on the MXU path; activations cast per-matmul

    state = state_ref[...].astype(mm_dtype)
    action = action_ref[...].astype(mm_dtype)

    # fc1 -> LayerNorm -> relu   (weights are (in, out): no transpose)
    h = jnp.dot(state, w1_ref[...], preferred_element_type=jnp.float32) + b1_ref[...]
    h = _layernorm(h, g1_ref[...], be1_ref[...])
    h = jnp.maximum(h, 0.0)

    # fc2 -> LayerNorm
    h = jnp.dot(h.astype(mm_dtype), w2_ref[...],
                preferred_element_type=jnp.float32) + b2_ref[...]
    h = _layernorm(h, g2_ref[...], be2_ref[...])

    # action branch: linear -> relu
    a = jnp.dot(action, wa_ref[...], preferred_element_type=jnp.float32) + ba_ref[...]
    a = jnp.maximum(a, 0.0)

    # combine, relu
    sa = jnp.maximum(h + a, 0.0)

    # q head (out_features == 1): VPU multiply + XLU lane-reduce, skip the MXU.
    q = jnp.sum(sa * wq_ref[...], axis=-1, keepdims=True) + bq_ref[0, 0]

    out_ref[...] = q.astype(out_ref.dtype)


def critic_forward(state, action, params, *, block_b=256):
    """Fused critic forward. state: (B, in_dims) f32, action: (B, act_dims) f32."""
    B, input_dims = state.shape
    action_dims = action.shape[1]
    fc1_dims = params["w1"].shape[1]
    fc2_dims = params["w2"].shape[1]

    # Batch tile: multiple of 8 (sublane), capped by block_b. Pad B up to a
    # multiple of TB so the (8,128) tiling constraint is satisfied.
    tb = min(block_b, B)
    tb = max(8, ((tb + 7) // 8) * 8)
    pad = (-B) % tb
    if pad:
        state = jnp.pad(state, ((0, pad), (0, 0)))
        action = jnp.pad(action, ((0, pad), (0, 0)))
    bp = B + pad
    grid = (bp // tb,)

    batched = lambda i: (i, 0)    # batch-tiled arrays
    resident = lambda i: (0, 0)   # weights/biases: same block every step -> stay in VMEM

    in_specs = [
        pl.BlockSpec((tb, input_dims), batched),                 # state
        pl.BlockSpec((tb, action_dims), batched),                # action
        pl.BlockSpec((input_dims, fc1_dims), resident),          # w1 (in,out)
        pl.BlockSpec((1, fc1_dims), resident),                   # b1
        pl.BlockSpec((1, fc1_dims), resident),                   # gamma1
        pl.BlockSpec((1, fc1_dims), resident),                   # beta1
        pl.BlockSpec((fc1_dims, fc2_dims), resident),            # w2 (in,out)
        pl.BlockSpec((1, fc2_dims), resident),                   # b2
        pl.BlockSpec((1, fc2_dims), resident),                   # gamma2
        pl.BlockSpec((1, fc2_dims), resident),                   # beta2
        pl.BlockSpec((action_dims, fc2_dims), resident),         # wa (in,out)
        pl.BlockSpec((1, fc2_dims), resident),                   # ba
        pl.BlockSpec((1, fc2_dims), resident),                   # wq row (f32)
        pl.BlockSpec(memory_space=pltpu.MemorySpace.SMEM),       # bq (1,1) scalar
    ]
    out_specs = pl.BlockSpec((tb, 1), batched)

    out = pl.pallas_call(
        critic_kernel,
        out_shape=jax.ShapeDtypeStruct((bp, 1), jnp.float32),
        grid=grid,
        in_specs=in_specs,
        out_specs=out_specs,
        compiler_params=pltpu.CompilerParams(
            dimension_semantics=("parallel",),   # shard batch tiles across TCs (v7x)
        ),
    )(
        state, action,
        params["w1"], params["b1"], params["g1"], params["be1"],
        params["w2"], params["b2"], params["g2"], params["be2"],
        params["wa"], params["ba"],
        params["wq"], params["bq"],
    )
    return out[:B]


def init_params(key, input_dims, action_dims, fc1_dims, fc2_dims,
                matmul_dtype=jnp.bfloat16):
    """PyTorch nn.Linear-style init (uniform ±1/sqrt(fan_in)).

    Matmul weights are stored pre-transposed (in_features, out_features) and in
    `matmul_dtype` (bf16 MXU operands, f32 accumulation). Biases / LN params /
    the q-head row stay f32 (elementwise path stays f32 for v5e)."""
    def linear(k, fan_in, fan_out):
        kw, kb = jax.random.split(k)
        bound = 1.0 / jnp.sqrt(fan_in)
        w = jax.random.uniform(kw, (fan_in, fan_out), jnp.float32, -bound, bound)
        b = jax.random.uniform(kb, (1, fan_out), jnp.float32, -bound, bound)
        return w, b

    k1, k2, ka, kq = jax.random.split(key, 4)
    w1, b1 = linear(k1, input_dims, fc1_dims)
    w2, b2 = linear(k2, fc1_dims, fc2_dims)
    wa, ba = linear(ka, action_dims, fc2_dims)
    wq, bq = linear(kq, fc2_dims, 1)
    return {
        "w1": w1.astype(matmul_dtype), "b1": b1,
        "g1": jnp.ones((1, fc1_dims), jnp.float32),
        "be1": jnp.zeros((1, fc1_dims), jnp.float32),
        "w2": w2.astype(matmul_dtype), "b2": b2,
        "g2": jnp.ones((1, fc2_dims), jnp.float32),
        "be2": jnp.zeros((1, fc2_dims), jnp.float32),
        "wa": wa.astype(matmul_dtype), "ba": ba,
        "wq": wq.T.astype(jnp.float32),          # (1, fc2) row for the VPU q head
        "bq": bq.reshape(1, 1),
    }


def critic_reference(state, action, p):
    """Pure-JAX reference mirroring the kernel math (same dtypes/order)."""
    mm = p["w1"].dtype
    h = jnp.dot(state.astype(mm), p["w1"], preferred_element_type=jnp.float32) + p["b1"]
    h = _layernorm(h, p["g1"], p["be1"])
    h = jnp.maximum(h, 0.0)
    h = jnp.dot(h.astype(mm), p["w2"], preferred_element_type=jnp.float32) + p["b2"]
    h = _layernorm(h, p["g2"], p["be2"])
    a = jnp.maximum(
        jnp.dot(action.astype(mm), p["wa"], preferred_element_type=jnp.float32) + p["ba"],
        0.0)
    sa = jnp.maximum(h + a, 0.0)
    return jnp.sum(sa * p["wq"], axis=-1, keepdims=True) + p["bq"]


if __name__ == "__main__":
    # Small but grid-exercising sizes: 4 batch tiles of 16 rows each.
    B, INPUT_DIMS, ACTION_DIMS, FC1, FC2 = 64, 16, 8, 64, 32

    key = jax.random.PRNGKey(0)
    kp, ks, ka = jax.random.split(key, 3)
    params = init_params(kp, INPUT_DIMS, ACTION_DIMS, FC1, FC2)
    state = jax.random.normal(ks, (B, INPUT_DIMS), jnp.float32)
    action = jax.random.normal(ka, (B, ACTION_DIMS), jnp.float32)

    q = critic_forward(state, action, params, block_b=16)
    q = jax.block_until_ready(q)

    q_ref = critic_reference(state, action, params)
    assert q.shape == (B, 1), q.shape
    assert jnp.allclose(q, q_ref, atol=2e-3, rtol=2e-3), (q, q_ref)

    print("KERNEL_OK")
</pallas_src>

<mosaic_0001>
module attributes {stable_mosaic.version = 11 : i64} {
  func.func @critic_kernel(%arg0: i32, %arg1: memref<16x16xf32, #tpu.memory_space<vmem>>, %arg2: memref<16x8xf32, #tpu.memory_space<vmem>>, %arg3: memref<16x64xbf16, #tpu.memory_space<vmem>>, %arg4: memref<1x64xf32, #tpu.memory_space<vmem>>, %arg5: memref<1x64xf32, #tpu.memory_space<vmem>>, %arg6: memref<1x64xf32, #tpu.memory_space<vmem>>, %arg7: memref<64x32xbf16, #tpu.memory_space<vmem>>, %arg8: memref<1x32xf32, #tpu.memory_space<vmem>>, %arg9: memref<1x32xf32, #tpu.memory_space<vmem>>, %arg10: memref<1x32xf32, #tpu.memory_space<vmem>>, %arg11: memref<8x32xbf16, #tpu.memory_space<vmem>>, %arg12: memref<1x32xf32, #tpu.memory_space<vmem>>, %arg13: memref<1x32xf32, #tpu.memory_space<vmem>>, %arg14: memref<1x1xf32, #tpu.memory_space<smem>>, %arg15: memref<16x1xf32, #tpu.memory_space<vmem>>) attributes {dimension_semantics = [#tpu.dimension_semantics<parallel>], iteration_bounds = array<i64: 4>, scalar_prefetch = 0 : i64, scratch_operands = 0 : i64, tpu.core_type = #tpu.core_type<tc>, window_params = [{transform_indices = @transform_0, window_bounds = array<i64: 16, 16>}, {transform_indices = @transform_1, window_bounds = array<i64: 16, 8>}, {pipeline_mode = #tpu.pipeline_mode<synchronous>, transform_indices = @transform_2, window_bounds = array<i64: 16, 64>}, {pipeline_mode = #tpu.pipeline_mode<synchronous>, transform_indices = @transform_3, window_bounds = array<i64: 1, 64>}, {pipeline_mode = #tpu.pipeline_mode<synchronous>, transform_indices = @transform_4, window_bounds = array<i64: 1, 64>}, {pipeline_mode = #tpu.pipeline_mode<synchronous>, transform_indices = @transform_5, window_bounds = array<i64: 1, 64>}, {pipeline_mode = #tpu.pipeline_mode<synchronous>, transform_indices = @transform_6, window_bounds = array<i64: 64, 32>}, {pipeline_mode = #tpu.pipeline_mode<synchronous>, transform_indices = @transform_7, window_bounds = array<i64: 1, 32>}, {pipeline_mode = #tpu.pipeline_mode<synchronous>, transform_indices = @transform_8, window_bounds = array<i64: 1, 32>}, {pipeline_mode = #tpu.pipeline_mode<synchronous>, transform_indices = @transform_9, window_bounds = array<i64: 1, 32>}, {pipeline_mode = #tpu.pipeline_mode<synchronous>, transform_indices = @transform_10, window_bounds = array<i64: 8, 32>}, {pipeline_mode = #tpu.pipeline_mode<synchronous>, transform_indices = @transform_11, window_bounds = array<i64: 1, 32>}, {pipeline_mode = #tpu.pipeline_mode<synchronous>, transform_indices = @transform_12, window_bounds = array<i64: 1, 32>}, {transform_indices = @transform_13, window_bounds = array<i64: 1, 1>}, {transform_indices = @transform_14, window_bounds = array<i64: 16, 1>}]} {
    %c0 = arith.constant 0 : index
    %c0_0 = arith.constant 0 : index
    %0 = vector.load %arg1[%c0, %c0_0] : memref<16x16xf32, #tpu.memory_space<vmem>>, vector<16x16xf32>
    %1 = arith.truncf %0 : vector<16x16xf32> to vector<16x16xbf16>
    %c0_1 = arith.constant 0 : index
    %c0_2 = arith.constant 0 : index
    %2 = vector.load %arg2[%c0_1, %c0_2] : memref<16x8xf32, #tpu.memory_space<vmem>>, vector<16x8xf32>
    %3 = arith.truncf %2 : vector<16x8xf32> to vector<16x8xbf16>
    %c0_3 = arith.constant 0 : index
    %c0_4 = arith.constant 0 : index
    %4 = vector.load %arg3[%c0_3, %c0_4] : memref<16x64xbf16, #tpu.memory_space<vmem>>, vector<16x64xbf16>
    %cst = arith.constant dense<0.000000e+00> : vector<16x64xf32>
    %5 = tpu.matmul %1, %4, %cst {dimension_numbers = #tpu.dot_dimension_numbers<[1], [0], [0], [1], [0, 0, 1, 1], [], []>} : vector<16x16xbf16>, vector<16x64xbf16>, vector<16x64xf32> -> vector<16x64xf32>
    %c0_5 = arith.constant 0 : index
    %c0_6 = arith.constant 0 : index
    %6 = vector.load %arg4[%c0_5, %c0_6] : memref<1x64xf32, #tpu.memory_space<vmem>>, vector<1x64xf32>
    %7 = vector.broadcast %6 : vector<1x64xf32> to vector<16x64xf32>
    %8 = arith.addf %5, %7 : vector<16x64xf32>
    %c0_7 = arith.constant 0 : index
    %c0_8 = arith.constant 0 : index
    %9 = vector.load %arg5[%c0_7, %c0_8] : memref<1x64xf32, #tpu.memory_space<vmem>>, vector<1x64xf32>
    %c0_9 = arith.constant 0 : index
    %c0_10 = arith.constant 0 : index
    %10 = vector.load %arg6[%c0_9, %c0_10] : memref<1x64xf32, #tpu.memory_space<vmem>>, vector<1x64xf32>
    %cst_11 = arith.constant dense<0.000000e+00> : vector<16xf32>
    %11 = vector.multi_reduction <add>, %8, %cst_11 [1] : vector<16x64xf32> to vector<16xf32>
    %12 = vector.shape_cast %11 : vector<16xf32> to vector<16x1xf32>
    %cst_12 = arith.constant 6.400000e+01 : f32
    %13 = vector.broadcast %cst_12 : f32 to vector<16x1xf32>
    %14 = arith.divf %12, %13 : vector<16x1xf32>
    %15 = vector.broadcast %14 : vector<16x1xf32> to vector<16x64xf32>
    %16 = arith.subf %8, %15 : vector<16x64xf32>
    %17 = arith.mulf %16, %16 : vector<16x64xf32>
    %cst_13 = arith.constant dense<0.000000e+00> : vector<16xf32>
    %18 = vector.multi_reduction <add>, %17, %cst_13 [1] : vector<16x64xf32> to vector<16xf32>
    %19 = vector.shape_cast %18 : vector<16xf32> to vector<16x1xf32>
    %cst_14 = arith.constant 6.400000e+01 : f32
    %20 = vector.broadcast %cst_14 : f32 to vector<16x1xf32>
    %21 = arith.divf %19, %20 : vector<16x1xf32>
    %cst_15 = arith.constant 9.99999974E-6 : f32
    %22 = vector.broadcast %cst_15 : f32 to vector<16x1xf32>
    %23 = arith.addf %21, %22 : vector<16x1xf32>
    %24 = math.rsqrt %23 : vector<16x1xf32>
    %25 = vector.broadcast %14 : vector<16x1xf32> to vector<16x64xf32>
    %26 = arith.subf %8, %25 : vector<16x64xf32>
    %27 = vector.broadcast %24 : vector<16x1xf32> to vector<16x64xf32>
    %28 = arith.mulf %26, %27 : vector<16x64xf32>
    %29 = vector.broadcast %9 : vector<1x64xf32> to vector<16x64xf32>
    %30 = arith.mulf %28, %29 : vector<16x64xf32>
    %31 = vector.broadcast %10 : vector<1x64xf32> to vector<16x64xf32>
    %32 = arith.addf %30, %31 : vector<16x64xf32>
    %cst_16 = arith.constant 0.000000e+00 : f32
    %33 = vector.broadcast %cst_16 : f32 to vector<16x64xf32>
    %34 = arith.maximumf %32, %33 : vector<16x64xf32>
    %35 = arith.truncf %34 : vector<16x64xf32> to vector<16x64xbf16>
    %c0_17 = arith.constant 0 : index
    %c0_18 = arith.constant 0 : index
    %36 = vector.load %arg7[%c0_17, %c0_18] : memref<64x32xbf16, #tpu.memory_space<vmem>>, vector<64x32xbf16>
    %cst_19 = arith.constant dense<0.000000e+00> : vector<16x32xf32>
    %37 = tpu.matmul %35, %36, %cst_19 {dimension_numbers = #tpu.dot_dimension_numbers<[1], [0], [0], [1], [0, 0, 1, 1], [], []>} : vector<16x64xbf16>, vector<64x32xbf16>, vector<16x32xf32> -> vector<16x32xf32>
    %c0_20 = arith.constant 0 : index
    %c0_21 = arith.constant 0 : index
    %38 = vector.load %arg8[%c0_20, %c0_21] : memref<1x32xf32, #tpu.memory_space<vmem>>, vector<1x32xf32>
    %39 = vector.broadcast %38 : vector<1x32xf32> to vector<16x32xf32>
    %40 = arith.addf %37, %39 : vector<16x32xf32>
    %c0_22 = arith.constant 0 : index
    %c0_23 = arith.constant 0 : index
    %41 = vector.load %arg9[%c0_22, %c0_23] : memref<1x32xf32, #tpu.memory_space<vmem>>, vector<1x32xf32>
    %c0_24 = arith.constant 0 : index
    %c0_25 = arith.constant 0 : index
    %42 = vector.load %arg10[%c0_24, %c0_25] : memref<1x32xf32, #tpu.memory_space<vmem>>, vector<1x32xf32>
    %cst_26 = arith.constant dense<0.000000e+00> : vector<16xf32>
    %43 = vector.multi_reduction <add>, %40, %cst_26 [1] : vector<16x32xf32> to vector<16xf32>
    %44 = vector.shape_cast %43 : vector<16xf32> to vector<16x1xf32>
    %cst_27 = arith.constant 3.200000e+01 : f32
    %45 = vector.broadcast %cst_27 : f32 to vector<16x1xf32>
    %46 = arith.divf %44, %45 : vector<16x1xf32>
    %47 = vector.broadcast %46 : vector<16x1xf32> to vector<16x32xf32>
    %48 = arith.subf %40, %47 : vector<16x32xf32>
    %49 = arith.mulf %48, %48 : vector<16x32xf32>
    %cst_28 = arith.constant dense<0.000000e+00> : vector<16xf32>
    %50 = vector.multi_reduction <add>, %49, %cst_28 [1] : vector<16x32xf32> to vector<16xf32>
    %51 = vector.shape_cast %50 : vector<16xf32> to vector<16x1xf32>
    %cst_29 = arith.constant 3.200000e+01 : f32
    %52 = vector.broadcast %cst_29 : f32 to vector<16x1xf32>
    %53 = arith.divf %51, %52 : vector<16x1xf32>
    %cst_30 = arith.constant 9.99999974E-6 : f32
    %54 = vector.broadcast %cst_30 : f32 to vector<16x1xf32>
    %55 = arith.addf %53, %54 : vector<16x1xf32>
    %56 = math.rsqrt %55 : vector<16x1xf32>
    %57 = vector.broadcast %46 : vector<16x1xf32> to vector<16x32xf32>
    %58 = arith.subf %40, %57 : vector<16x32xf32>
    %59 = vector.broadcast %56 : vector<16x1xf32> to vector<16x32xf32>
    %60 = arith.mulf %58, %59 : vector<16x32xf32>
    %61 = vector.broadcast %41 : vector<1x32xf32> to vector<16x32xf32>
    %62 = arith.mulf %60, %61 : vector<16x32xf32>
    %63 = vector.broadcast %42 : vector<1x32xf32> to vector<16x32xf32>
    %64 = arith.addf %62, %63 : vector<16x32xf32>
    %c0_31 = arith.constant 0 : index
    %c0_32 = arith.constant 0 : index
    %65 = vector.load %arg11[%c0_31, %c0_32] : memref<8x32xbf16, #tpu.memory_space<vmem>>, vector<8x32xbf16>
    %cst_33 = arith.constant dense<0.000000e+00> : vector<16x32xf32>
    %66 = tpu.matmul %3, %65, %cst_33 {dimension_numbers = #tpu.dot_dimension_numbers<[1], [0], [0], [1], [0, 0, 1, 1], [], []>} : vector<16x8xbf16>, vector<8x32xbf16>, vector<16x32xf32> -> vector<16x32xf32>
    %c0_34 = arith.constant 0 : index
    %c0_35 = arith.constant 0 : index
    %67 = vector.load %arg12[%c0_34, %c0_35] : memref<1x32xf32, #tpu.memory_space<vmem>>, vector<1x32xf32>
    %68 = vector.broadcast %67 : vector<1x32xf32> to vector<16x32xf32>
    %69 = arith.addf %66, %68 : vector<16x32xf32>
    %cst_36 = arith.constant 0.000000e+00 : f32
    %70 = vector.broadcast %cst_36 : f32 to vector<16x32xf32>
    %71 = arith.maximumf %69, %70 : vector<16x32xf32>
    %72 = arith.addf %64, %71 : vector<16x32xf32>
    %cst_37 = arith.constant 0.000000e+00 : f32
    %73 = vector.broadcast %cst_37 : f32 to vector<16x32xf32>
    %74 = arith.maximumf %72, %73 : vector<16x32xf32>
    %c0_38 = arith.constant 0 : index
    %c0_39 = arith.constant 0 : index
    %75 = vector.load %arg13[%c0_38, %c0_39] : memref<1x32xf32, #tpu.memory_space<vmem>>, vector<1x32xf32>
    %76 = vector.broadcast %75 : vector<1x32xf32> to vector<16x32xf32>
    %77 = arith.mulf %74, %76 : vector<16x32xf32>
    %cst_40 = arith.constant dense<0.000000e+00> : vector<16xf32>
    %78 = vector.multi_reduction <add>, %77, %cst_40 [1] : vector<16x32xf32> to vector<16xf32>
    %79 = vector.shape_cast %78 : vector<16xf32> to vector<16x1xf32>
    %c0_41 = arith.constant 0 : index
    %c0_42 = arith.constant 0 : index
    %80 = memref.load %arg14[%c0_41, %c0_42] : memref<1x1xf32, #tpu.memory_space<smem>>
    %81 = vector.broadcast %80 : f32 to vector<16x1xf32>
    %82 = arith.addf %79, %81 : vector<16x1xf32>
    %c0_43 = arith.constant 0 : index
    %c0_44 = arith.constant 0 : index
    %83 = vector.load %arg15[%c0_43, %c0_44] : memref<16x1xf32, #tpu.memory_space<vmem>>, vector<16x1xf32>
    tpu.vector_store %arg15[%c0_43, %c0_44], %82 {strides = array<i32>} : memref<16x1xf32, #tpu.memory_space<vmem>>, vector<16x1xf32>,
    return
  }
  func.func @transform_0(%arg0: i32) -> (i32, i32) {
    %c0_i32 = arith.constant 0 : i32
    %c0_i32_0 = arith.constant 0 : i32
    return %arg0, %c0_i32 : i32, i32
  }
  func.func @transform_1(%arg0: i32) -> (i32, i32) {
    %c0_i32 = arith.constant 0 : i32
    %c0_i32_0 = arith.constant 0 : i32
    return %arg0, %c0_i32 : i32, i32
  }
  func.func @transform_2(%arg0: i32) -> (i32, i32) {
    %c0_i32 = arith.constant 0 : i32
    %c0_i32_0 = arith.constant 0 : i32
    %c0_i32_1 = arith.constant 0 : i32
    return %c0_i32, %c0_i32_0 : i32, i32
  }
  func.func @transform_3(%arg0: i32) -> (i32, i32) {
    %c0_i32 = arith.constant 0 : i32
    %c0_i32_0 = arith.constant 0 : i32
    %c0_i32_1 = arith.constant 0 : i32
    return %c0_i32, %c0_i32_0 : i32, i32
  }
  func.func @transform_4(%arg0: i32) -> (i32, i32) {
    %c0_i32 = arith.constant 0 : i32
    %c0_i32_0 = arith.constant 0 : i32
    %c0_i32_1 = arith.constant 0 : i32
    return %c0_i32, %c0_i32_0 : i32, i32
  }
  func.func @transform_5(%arg0: i32) -> (i32, i32) {
    %c0_i32 = arith.constant 0 : i32
    %c0_i32_0 = arith.constant 0 : i32
    %c0_i32_1 = arith.constant 0 : i32
    return %c0_i32, %c0_i32_0 : i32, i32
  }
  func.func @transform_6(%arg0: i32) -> (i32, i32) {
    %c0_i32 = arith.constant 0 : i32
    %c0_i32_0 = arith.constant 0 : i32
    %c0_i32_1 = arith.constant 0 : i32
    return %c0_i32, %c0_i32_0 : i32, i32
  }
  func.func @transform_7(%arg0: i32) -> (i32, i32) {
    %c0_i32 = arith.constant 0 : i32
    %c0_i32_0 = arith.constant 0 : i32
    %c0_i32_1 = arith.constant 0 : i32
    return %c0_i32, %c0_i32_0 : i32, i32
  }
  func.func @transform_8(%arg0: i32) -> (i32, i32) {
    %c0_i32 = arith.constant 0 : i32
    %c0_i32_0 = arith.constant 0 : i32
    %c0_i32_1 = arith.constant 0 : i32
    return %c0_i32, %c0_i32_0 : i32, i32
  }
  func.func @transform_9(%arg0: i32) -> (i32, i32) {
    %c0_i32 = arith.constant 0 : i32
    %c0_i32_0 = arith.constant 0 : i32
    %c0_i32_1 = arith.constant 0 : i32
    return %c0_i32, %c0_i32_0 : i32, i32
  }
  func.func @transform_10(%arg0: i32) -> (i32, i32) {
    %c0_i32 = arith.constant 0 : i32
    %c0_i32_0 = arith.constant 0 : i32
    %c0_i32_1 = arith.constant 0 : i32
    return %c0_i32, %c0_i32_0 : i32, i32
  }
  func.func @transform_11(%arg0: i32) -> (i32, i32) {
    %c0_i32 = arith.constant 0 : i32
    %c0_i32_0 = arith.constant 0 : i32
    %c0_i32_1 = arith.constant 0 : i32
    return %c0_i32, %c0_i32_0 : i32, i32
  }
  func.func @transform_12(%arg0: i32) -> (i32, i32) {
    %c0_i32 = arith.constant 0 : i32
    %c0_i32_0 = arith.constant 0 : i32
    %c0_i32_1 = arith.constant 0 : i32
    return %c0_i32, %c0_i32_0 : i32, i32
  }
  func.func @transform_13(%arg0: i32) -> (i32, i32) {
    %c0_i32 = arith.constant 0 : i32
    %c0_i32_0 = arith.constant 0 : i32
    %c0_i32_1 = arith.constant 0 : i32
    return %c0_i32, %c0_i32_0 : i32, i32
  }
  func.func @transform_14(%arg0: i32) -> (i32, i32) {
    %c0_i32 = arith.constant 0 : i32
    %c0_i32_0 = arith.constant 0 : i32
    return %arg0, %c0_i32 : i32, i32
  }
}

</mosaic_0001>

<bundles_post_ra>
// kernel: tpu_custom_call.1
= control target key start
LH: loop header
LB: loop body
LE: loop exit
PB: predicated region body
PF: predicated region fallthrough
CT: control target
= control target key end

     0   :  { %s1065_s15 = smov 0   ;;  %s1143_s0 = inlined_call_operand.vmem [shape: f32[64,16], index: 0, kind: input, shape index: {}]   ;;  %s1144_s1 = inlined_call_operand.vmem [shape: f32[64,8], index: 1, kind: input, shape index: {}]   ;;  %s1145_s2 = inlined_call_operand.vmem [shape: bf16[16,64], index: 2, kind: input, shape index: {}]   ;;  %s1146_s3 = inlined_call_operand.vmem [shape: f32[1,64], index: 3, kind: input, shape index: {}]   ;;  %s1147_s4 = inlined_call_operand.vmem [shape: f32[1,64], index: 4, kind: input, shape index: {}]   ;;  %s1148_s5 = inlined_call_operand.vmem [shape: f32[1,64], index: 5, kind: input, shape index: {}]   ;;  %s1149_s6 = inlined_call_operand.vmem [shape: bf16[64,32], index: 6, kind: input, shape index: {}]   ;;  %s1150_s7 = inlined_call_operand.vmem [shape: f32[1,32], index: 7, kind: input, shape index: {}]   ;;  %s1151_s8 = inlined_call_operand.vmem [shape: f32[1,32], index: 8, kind: input, shape index: {}]   ;;  %s1152_s9 = inlined_call_operand.vmem [shape: f32[1,32], index: 9, kind: input, shape index: {}]   ;;  %s1153_s10 = inlined_call_operand.vmem [shape: bf16[8,32], index: 10, kind: input, shape index: {}]   ;;  %s1154_s11 = inlined_call_operand.vmem [shape: f32[1,32], index: 11, kind: input, shape index: {}]   ;;  %s1155_s12 = inlined_call_operand.vmem [shape: f32[1,32], index: 12, kind: input, shape index: {}]   ;;  %s1156_s13 = inlined_call_operand.<no memory space> [shape: f32[1,1], index: 13, kind: input, shape index: {}]   ;;  %s1157_s14 = inlined_call_operand.vmem [shape: f32[64,1], index: 14, kind: output, shape index: {}]  }
   0x1   :  { %19 = sst [smem:[#allocation2]] %s1156_s13 }
   0x2 LB: > { %s892_s16 = sadd.s32 4294967295, %s983_s15   ;;  %p896_p0 = scmp.ge.s32.totalorder %s983_s15, 1  ;;  %s983_s15 = sphi %s1065_s15, %s25_s15  }
   0x3   : > { %p425_p1 = scmp.lt.s32.totalorder %s983_s15, 5 }
   0x5   : > { %p426_p2 = pnand %p896_p0, %p425_p1 }
   0x6   : > { %v964_v0 = vld [vmem:[%s1145_s2] sm:$0xff] (!%p426_p2)   ;;  %v985_v1 = vmov (!%p426_p2), 0.0   ;;  %s897_s13 = sshll.u32 (!%p426_p2), %s892_s16, 1  ;;  %vm986_vm0 = vmmov (!%p426_p2), 0   ;;  %vm516_vm1 = vcmask (!%p426_p2), 130048   ;;  %vm563_vm2 = vcmask (!%p426_p2), 523264  }
   0x7   : > { %429 = sbr.rel (%p426_p2) target bundleno = 1236 (0x4d4), region = 76  ;;  %930 = vmatprep.subr.bf16.mxu0 (!%p426_p2), %v985_v1  ;;  %936 = vmatprep.subr.bf16.mxu1 (!%p426_p2), %v985_v1  ;;  %p477_p3 = scmp.lt.s32.totalorder (!%p426_p2), %s897_s13, 7  ;;  %v903_v5 = vld [vmem:[%s1146_s3] ss:$0 sm:$0xff] (!%p426_p2)  ;;  %v966_v25 = vld [vmem:[%s1149_s6 + $0x8] sm:$0xff] (!%p426_p2)   ;;  %v967_v26 = vld [vmem:[%s1149_s6 + $0x10] sm:$0xff] (!%p426_p2)  }
   0x8   : > { %931 = vmatpush3.bf16.msra.mxu0 (!%p426_p2), %v964_v0  ;;  %932 = vmatprep.mubr.msk.bf16.mxu0 (!%p426_p2), %vm986_vm0, %v985_v1  ;;  %v965_v24 = vld [vmem:[%s1149_s6] sm:$0xff] (!%p426_p2)   ;;  %v968_v27 = vld [vmem:[%s1149_s6 + $0x18] sm:$0xff] (!%p426_p2)   ;;  %vm751_vm3 = vcmask (!%p426_p2), 1043456   ;;  %vm747_vm4 = vcmask (!%p426_p2), 64512   ;;  %vm695_vm5 = vcmask (!%p426_p2), 261120   ;;  %vm821_vm6 = vcmask (!%p426_p2), 7168  }
   0x9   : > { %944 = vmatprep.mubr.msk.bf16.mxu1 (!%p426_p2), %vm986_vm0, %v985_v1  ;;  %948 = vmatprep.subr.bf16.mxu0 (!%p426_p2), %v985_v1  ;;  %v906_v35 = vld [vmem:[%s1147_s4] ss:$0 sm:$0xff] (!%p426_p2) }
   0xa   : > { %937 = vmatpush3.bf16.msra.mxu1 (!%p426_p2), %v965_v24  ;;  %v907_v39 = vld [vmem:[%s1148_s5] ss:$0 sm:$0xff] (!%p426_p2) }
   0xb   : > { %938 = vmatprep.subr.bf16.mxu1 (!%p426_p2), %v985_v1  ;;  %v739_v47 = vld [vmem:[%s1153_s10] sm:$0xf] (!%p426_p2) }
   0xc   : > { %v753_v48 = vsel (!%p426_p2), %vm751_vm3, %v739_v47, 0  ;;  %v908_v52 = vld [vmem:[%s1150_s7] ss:$0 sm:$0xff] (!%p426_p2) }
   0xe   : > { %s1159_s13 = smov (!%p477_p3, %s897_s13), 7  ;;  %939 = vmatpush3.bf16.msra.mxu1 %v966_v25 }
   0xf   : > { %s1076_s19 = sshll.u32 %s1159_s13, 3  ;;  %940 = vmatprep.subr.bf16.mxu1 %v985_v1 }
  0x10   : > { %s480_s22 = scalar_lea.vmem %s1143_s0, %s1076_s19  ;;  %s486_s26 = scalar_lea.vmem %s1144_s1, %s1076_s19 }
  0x11   : > { %v495_v2 = vld [vmem:[%s480_s22] sm:$0xff]  ;;  %v496_v3 = vld [vmem:[%s480_s22 + $0x8] sm:$0xff]  ;;  %s817_s22 = sld [smem:[#allocation2]]  ;;  %s492_s25 = scalar_lea.vmem %s1157_s14, %s1076_s19 }
  0x12   : > { %v497_v4 = vpack.c.bf16 %v496_v3, %v495_v2  ;;  %941 = vmatpush3.bf16.msra.mxu1 %v967_v26  ;;  %v498_v49 = vld [vmem:[%s486_s26] sm:$0xff]  ;;  %v499_v50 = vld [vmem:[%s486_s26 + $0x8] sm:$0xff] }
  0x13   : > { %942 = vmatprep.subr.bf16.mxu1 %v985_v1  ;;  %v500_v51 = vpack.c.bf16 %v499_v50, %v498_v49 }
  0x14   : > { %933 = vmatmul.mubr.msk.bf16.vlgmr.msra.gmra.mrb[0].mxu0 %vm516_vm1, %v497_v4 }
  0x15   : > { %950 = vmatprep.mubr.msk.bf16.mxu0 %vm986_vm0, %v985_v1  ;;  %949 = vmatpush3.bf16.msra.mxu0 %v753_v48 }
  0x16   : > { %943 = vmatpush3.bf16.msra.mxu1 %v968_v27 }
  0x1c   : > { %951 = vmatmul.mubr.msk.bf16.vlgmr.msra.gmra.mrb[4].mxu0 %vm747_vm4, %v500_v51 }
  0xe7   : > { %v554_v6 = vpop.f32.mrb[0].mxu0 }
  0xe8   : > { %v555_v7 = vadd.f32 %v903_v5, %v554_v6  ;;  %v934_v8 = vpop.f32.mrb[1].mxu0 }
  0xe9   : > { %v557_v9 = vpop.f32.mrb[2].mxu0 }
  0xea   : > { %v558_v10 = vadd.f32 %v903_v5, %v557_v9  ;;  %v935_v11 = vpop.f32.mrb[3].mxu0  ;;  %v564_v12 = vsel %vm563_vm2, %v555_v7, 0.0 }
  0xeb   : > { %565 = vadd.xlane.f32.xlu0 %v564_v12 }
  0xec   : > { %v567_v13 = vsel %vm563_vm2, %v558_v10, 0.0 }
  0xef   : > { %568 = vadd.xlane.f32.xlu0 %v567_v13 }
 0x178   : > { %v566_v14 = vpop.xlane.xlu0 %565 }
 0x179   : > { %v571_v15 = vmul.f32 0.015625, %v566_v14 }
 0x17b   : > { %v573_v16 = vsub.f32 %v555_v7, %v571_v15  ;;  %v789_v7 = vpop.f32.mrb[4].mxu0 }
 0x17c   : > { %v569_v17 = vpop.xlane.xlu0 %568  ;;  %v952_v8 = vpop.f32.mrb[5].mxu0 }
 0x17d   : > { %v572_v18 = vmul.f32 0.015625, %v569_v17  ;;  %v575_v19 = vmul.f32 %v573_v16, %v573_v16  ;;  %v792_v9 = vpop.f32.mrb[6].mxu0  ;;  %v916_v17 = vld [vmem:[%s1154_s11] ss:$0 sm:$0xff] }
 0x17e   : > { %v793_v27 = vadd.f32 %v916_v17, %v792_v9 }
 0x17f   : > { %v574_v20 = vsub.f32 %v558_v10, %v572_v18  ;;  %v577_v21 = vsel %vm563_vm2, %v575_v19, 0.0  ;;  %v953_v10 = vpop.f32.mrb[7].mxu0  ;;  %v790_v18 = vadd.f32 %v916_v17, %v789_v7 }
 0x180   : > { %578 = vadd.xlane.f32.xlu1 %v577_v21 }
 0x181   : > { %v576_v22 = vmul.f32 %v574_v20, %v574_v20  ;;  %v796_v25 = vmax.f32 %v790_v18, 0.0 }
 0x183   : > { %v580_v23 = vsel %vm563_vm2, %v576_v22, 0.0 }
 0x184   : > { %581 = vadd.xlane.f32.xlu1 %v580_v23  ;;  %v915_v23 = vld [vmem:[%s1152_s9] ss:$0 sm:$0xff] }
 0x20d   : > { %v579_v28 = vpop.xlane.xlu1 %578 }
 0x20e   : > { %v583_v29 = vmul.f32 0.015625, %v579_v28 }
 0x210   : > { %v585_v30 = vadd.f32 1e-05, %v583_v29 }
 0x211   : > { %v582_v31 = vpop.xlane.xlu1 %581 }
 0x212   : > { %969 = vrsqrt.f32 %v585_v30  ;;  %v584_v32 = vmul.f32 0.015625, %v582_v31 }
 0x214   : > { %v586_v33 = vadd.f32 1e-05, %v584_v32  ;;  %v797_v32 = vmax.f32 %v793_v27, 0.0 }
 0x216   : > { %971 = vrsqrt.f32 %v586_v33  ;;  %v918_v33 = vld [vmem:[%s1155_s12] ss:$0 sm:$0xff] }
 0x21c   : > { %v970_v34 = vpop.eup %969 }
 0x21d   : > { %v589_v36 = vmul.f32 %v970_v34, %v573_v16 }
 0x21f   : > { %v597_v37 = vmul.f32 %v906_v35, %v589_v36 }
 0x220   : > { %v972_v38 = vpop.eup %971 }
 0x221   : > { %v590_v40 = vmul.f32 %v972_v38, %v574_v20  ;;  %v605_v42 = vadd.f32 %v907_v39, %v597_v37  ;;  %v914_v20 = vld [vmem:[%s1151_s8] ss:$0 sm:$0xff] }
 0x223   : > { %v598_v41 = vmul.f32 %v906_v35, %v590_v40  ;;  %v607_v44 = vmax.f32 %v605_v42, 0.0 }
 0x225   : > { %v606_v43 = vadd.f32 %v907_v39, %v598_v41  ;;  %v818_v41 = vstv %s817_s22 }
 0x227   : > { %v608_v45 = vmax.f32 %v606_v43, 0.0 }
 0x229   : > { %v609_v46 = vpack.c.bf16 %v608_v45, %v607_v44 }
 0x22b   : > { %945 = vmatmul.mubr.msk.bf16.vlgmr.msra.gmra.mrb[0].mxu1 %vm563_vm2, %v609_v46 }
 0x2fe   : > { %v686_v53 = vpop.f32.mrb[0].mxu1 }
 0x2ff   : > { %v687_v54 = vadd.f32 %v908_v52, %v686_v53  ;;  %v946_v55 = vpop.f32.mrb[1].mxu1 }
 0x300   : > { %v689_v56 = vpop.f32.mrb[2].mxu1 }
 0x301   : > { %v690_v57 = vadd.f32 %v908_v52, %v689_v56  ;;  %v947_v58 = vpop.f32.mrb[3].mxu1  ;;  %v696_v59 = vsel %vm695_vm5, %v687_v54, 0.0 }
 0x302   : > { %697 = vadd.xlane.f32.xlu0 %v696_v59 }
 0x303   : > { %v699_v60 = vsel %vm695_vm5, %v690_v57, 0.0 }
 0x304   : > { %700 = vadd.xlane.f32.xlu1 %v699_v60 }
 0x38f   : > { %v698_v61 = vpop.xlane.xlu0 %697 }
 0x390   : > { %v703_v62 = vmul.f32 0.03125, %v698_v61 }
 0x391   : > { %v701_v63 = vpop.xlane.xlu1 %700 }
 0x392   : > { %v705_v0 = vsub.f32 %v687_v54, %v703_v62  ;;  %v704_v1 = vmul.f32 0.03125, %v701_v63 }
 0x394   : > { %v706_v2 = vsub.f32 %v690_v57, %v704_v1  ;;  %v707_v3 = vmul.f32 %v705_v0, %v705_v0 }
 0x396   : > { %v709_v4 = vsel %vm695_vm5, %v707_v3, 0.0  ;;  %v708_v5 = vmul.f32 %v706_v2, %v706_v2 }
 0x397   : > { %710 = vadd.xlane.f32.xlu0 %v709_v4 }
 0x398   : > { %v712_v6 = vsel %vm695_vm5, %v708_v5, 0.0 }
 0x399   : > { %713 = vadd.xlane.f32.xlu1 %v712_v6 }
 0x424   : > { %v711_v11 = vpop.xlane.xlu0 %710 }
 0x425   : > { %v715_v12 = vmul.f32 0.03125, %v711_v11 }
 0x426   : > { %v714_v13 = vpop.xlane.xlu1 %713 }
 0x427   : > { %v717_v14 = vadd.f32 1e-05, %v715_v12  ;;  %v716_v15 = vmul.f32 0.03125, %v714_v13 }
 0x429   : > { %973 = vrsqrt.f32 %v717_v14  ;;  %v718_v16 = vadd.f32 1e-05, %v716_v15 }
 0x42b   : > { %975 = vrsqrt.f32 %v718_v16 }
 0x433   : > { %v974_v19 = vpop.eup %973 }
 0x434   : > { %v721_v21 = vmul.f32 %v974_v19, %v705_v0 }
 0x435   : > { %v976_v22 = vpop.eup %975 }
 0x436   : > { %v729_v24 = vmul.f32 %v914_v20, %v721_v21  ;;  %v722_v26 = vmul.f32 %v976_v22, %v706_v2 }
 0x438   : > { %v737_v28 = vadd.f32 %v915_v23, %v729_v24  ;;  %v730_v29 = vmul.f32 %v914_v20, %v722_v26 }
 0x43a   : > { %v798_v30 = vadd.f32 %v796_v25, %v737_v28  ;;  %v738_v31 = vadd.f32 %v915_v23, %v730_v29 }
 0x43c   : > { %v800_v34 = vmax.f32 %v798_v30, 0.0  ;;  %v799_v35 = vadd.f32 %v797_v32, %v738_v31 }
 0x43e   : > { %v801_v36 = vmax.f32 %v799_v35, 0.0  ;;  %v809_v37 = vmul.f32 %v918_v33, %v800_v34 }
 0x440   : > { %v811_v38 = vsel %vm695_vm5, %v809_v37, 0.0  ;;  %v810_v39 = vmul.f32 %v918_v33, %v801_v36 }
 0x441   : > { %812 = vadd.xlane.f32.xlu0 %v811_v38 }
 0x442   : > { %v814_v40 = vsel %vm695_vm5, %v810_v39, 0.0 }
 0x443   : > { %815 = vadd.xlane.f32.xlu1 %v814_v40 }
 0x4ce   : > { %v813_v42 = vpop.xlane.xlu0 %812 }
 0x4cf   : > { %v819_v43 = vadd.f32 %v818_v41, %v813_v42 }
 0x4d0   : > { %v816_v44 = vpop.xlane.xlu1 %815 }
 0x4d1   : > { %822 = vst.msk [vmem:[%s492_s25] sm:$0xff] %vm821_vm6, %v819_v43  ;;  %v820_v45 = vadd.f32 %v818_v41, %v816_v44 }
 0x4d3   : > { %823 = vst.msk [vmem:[%s492_s25 + $0x8] sm:$0xff] %vm821_vm6, %v820_v45 }
 0x4d4 PF: > { %s25_s15 = sadd.s32 1, %s983_s15  }
 0x4d5   : > { %p22_p4 = scmp.ge.s32.totalorder %s25_s15, 6  }
 0x4d7   :  { %24 = sbr.rel (!%p22_p4) target bundleno = 2 (0x2), region = 109 }

</bundles_post_ra>
